<compile_context>
chip_gen: v6e
topology: v6e:2x2x1
jax: 0.10.0
libtpu: 0.0.40
codegen_flags: <defaults>
</compile_context>

<pallas_src>
import functools

import jax
import jax.numpy as jnp
from jax.experimental import pallas as pl
from jax.experimental.pallas import tpu as pltpu


def _round_up(x, m):
    return ((x + m - 1) // m) * m


def _actor_kernel(obs_ref, w_ref, b_ref, out_ref):
    """Fused linear + bias + tanh for one batch tile.

    obs_ref: [TILE_B, S]   w_ref: [S, A]   b_ref: [1, A]   out_ref: [TILE_B, A]
    """
    phi = obs_ref[...]                                    # DummyBody: identity
    z = jnp.dot(phi, w_ref[...], preferred_element_type=jnp.float32)   # MXU
    z = z + b_ref[...]                                    # bias broadcast (VPU)
    out_ref[...] = jnp.tanh(z).astype(out_ref.dtype)      # f32 tanh (EUP), cast on store


def deterministic_actor_critic_forward(obs, w_action, b_action, *,
                                       tile_b=2048, out_dtype=None):
    """forward(obs) = tanh(obs @ w_action + b_action).

    obs:      [B, state_dim]
    w_action: [state_dim, action_dim]   (PyTorch weight, pre-transposed)
    b_action: [action_dim]
    Returns:  [B, action_dim] in out_dtype (default: obs.dtype).
    """
    B, S = obs.shape
    S2, A = w_action.shape
    assert S == S2, (S, S2)
    out_dtype = obs.dtype if out_dtype is None else jnp.dtype(out_dtype)

    # Dtype-aware sublane granule for the output block's row dimension.
    if out_dtype == jnp.bfloat16:
        granule = 16
    elif jnp.dtype(out_dtype).itemsize == 1:
        granule = 32
    else:
        granule = 8

    # Batch tile: as large as useful, never larger than needed for B, and
    # capped so large batches get >=2 grid steps (both TCs busy on v7x).
    tb = min(tile_b, _round_up(B, granule))
    if B > granule:
        tb = min(tb, _round_up(pl.cdiv(B, 2), granule))
    grid = (pl.cdiv(B, tb),)

    bias_2d = b_action.reshape(1, A)

    return pl.pallas_call(
        _actor_kernel,
        out_shape=jax.ShapeDtypeStruct((B, A), out_dtype),
        grid_spec=pltpu.PrefetchScalarGridSpec(
            num_scalar_prefetch=0,
            grid=grid,
            in_specs=[
                # Streamed batch tiles of obs (last dim S = full extent).
                pl.BlockSpec((tb, S), lambda i: (i, 0)),
                # Weights / bias resident across the whole grid (full extents).
                pl.BlockSpec((S, A), lambda i: (0, 0)),
                pl.BlockSpec((1, A), lambda i: (0, 0)),
            ],
            # Unpadded, lane-exact output block (A equals full last dim).
            out_specs=pl.BlockSpec((tb, A), lambda i: (i, 0)),
        ),
        compiler_params=pltpu.CompilerParams(
            dimension_semantics=("parallel",),   # shard batch across TCs on v7x
        ),
    )(obs, w_action, bias_2d)


def _orthogonal_init(key, rows, cols, gain):
    """Deterministic orthogonal-style init (matches layer_init semantics)."""
    a = jax.random.normal(key, (max(rows, cols), min(rows, cols)), jnp.float32)
    q, _ = jnp.linalg.qr(a)
    q = q[:rows, :cols] if rows >= cols else q.T[:rows, :cols]
    return gain * q


if __name__ == "__main__":
    key = jax.random.PRNGKey(0)
    k_obs, k_w, k_big = jax.random.split(key, 3)

    batch, state_dim, action_dim = 8, 32, 8

    obs = jax.random.normal(k_obs, (batch, state_dim), dtype=jnp.float32)

    # fc_action: Linear(state_dim, action_dim), layer_init scale 0.001, bias 0.
    # PyTorch weight is [action_dim, state_dim]; we store transposed [S, A].
    w_pt = _orthogonal_init(k_w, action_dim, state_dim, gain=1e-3)   # [A, S]
    w_action = jnp.asarray(w_pt.T)                                   # [S, A]
    b_action = jnp.zeros((action_dim,), dtype=jnp.float32)

    fwd = jax.jit(functools.partial(deterministic_actor_critic_forward))
    fwd_bf16 = jax.jit(functools.partial(deterministic_actor_critic_forward,
                                         out_dtype=jnp.bfloat16))

    # Small batch (single tile, single grid step).
    out = jax.block_until_ready(fwd(obs, w_action, b_action))
    ref = jnp.tanh(obs @ w_action + b_action)
    assert out.shape == (batch, action_dim)
    assert out.dtype == jnp.float32
    assert jnp.allclose(out, ref, atol=1e-5), "small-batch mismatch vs reference"

    # Larger batch to exercise the multi-step streaming grid (>=2 grid steps).
    big_b = 1024
    obs_big = jax.random.normal(k_big, (big_b, state_dim), dtype=jnp.float32)
    out_big = jax.block_until_ready(fwd(obs_big, w_action, b_action))
    ref_big = jnp.tanh(obs_big @ w_action + b_action)
    assert out_big.shape == (big_b, action_dim)
    assert jnp.allclose(out_big, ref_big, atol=1e-5), "big-batch mismatch vs reference"

    # bf16 writeback path (f32 compute, cast on store).
    out_bf16 = jax.block_until_ready(fwd_bf16(obs_big, w_action, b_action))
    assert out_bf16.dtype == jnp.bfloat16
    assert jnp.allclose(out_bf16.astype(jnp.float32), ref_big, atol=1e-2), \
        "bf16-output mismatch vs reference"

    print("KERNEL_OK")
</pallas_src>

<mosaic_0001>
module attributes {stable_mosaic.version = 11 : i64} {
  func.func @_actor_kernel(%arg0: i32, %arg1: memref<8x32xf32, #tpu.memory_space<vmem>>, %arg2: memref<32x8xf32, #tpu.memory_space<vmem>>, %arg3: memref<1x8xf32, #tpu.memory_space<vmem>>, %arg4: memref<8x8xf32, #tpu.memory_space<vmem>>) attributes {dimension_semantics = [#tpu.dimension_semantics<parallel>], iteration_bounds = array<i64: 1>, scalar_prefetch = 0 : i64, scratch_operands = 0 : i64, tpu.core_type = #tpu.core_type<tc>, window_params = [{transform_indices = @transform_0, window_bounds = array<i64: 8, 32>}, {pipeline_mode = #tpu.pipeline_mode<synchronous>, transform_indices = @transform_1, window_bounds = array<i64: 32, 8>}, {pipeline_mode = #tpu.pipeline_mode<synchronous>, transform_indices = @transform_2, window_bounds = array<i64: 1, 8>}, {transform_indices = @transform_3, window_bounds = array<i64: 8, 8>}]} {
    %c0 = arith.constant 0 : index
    %c0_0 = arith.constant 0 : index
    %0 = vector.load %arg1[%c0, %c0_0] : memref<8x32xf32, #tpu.memory_space<vmem>>, vector<8x32xf32>
    %c0_1 = arith.constant 0 : index
    %c0_2 = arith.constant 0 : index
    %1 = vector.load %arg2[%c0_1, %c0_2] : memref<32x8xf32, #tpu.memory_space<vmem>>, vector<32x8xf32>
    %cst = arith.constant dense<0.000000e+00> : vector<8x8xf32>
    %2 = tpu.matmul %0, %1, %cst {dimension_numbers = #tpu.dot_dimension_numbers<[1], [0], [0], [1], [0, 0, 1, 1], [], []>} : vector<8x32xf32>, vector<32x8xf32>, vector<8x8xf32> -> vector<8x8xf32>
    %c0_3 = arith.constant 0 : index
    %c0_4 = arith.constant 0 : index
    %3 = vector.load %arg3[%c0_3, %c0_4] : memref<1x8xf32, #tpu.memory_space<vmem>>, vector<1x8xf32>
    %4 = vector.broadcast %3 : vector<1x8xf32> to vector<8x8xf32>
    %5 = arith.addf %2, %4 : vector<8x8xf32>
    %6 = math.tanh %5 : vector<8x8xf32>
    %c0_5 = arith.constant 0 : index
    %c0_6 = arith.constant 0 : index
    %7 = vector.load %arg4[%c0_5, %c0_6] : memref<8x8xf32, #tpu.memory_space<vmem>>, vector<8x8xf32>
    tpu.vector_store %arg4[%c0_5, %c0_6], %6 {strides = array<i32>} : memref<8x8xf32, #tpu.memory_space<vmem>>, vector<8x8xf32>,
    return
  }
  func.func @transform_0(%arg0: i32) -> (i32, i32) {
    %c0_i32 = arith.constant 0 : i32
    %c0_i32_0 = arith.constant 0 : i32
    return %arg0, %c0_i32 : i32, i32
  }
  func.func @transform_1(%arg0: i32) -> (i32, i32) {
    %c0_i32 = arith.constant 0 : i32
    %c0_i32_0 = arith.constant 0 : i32
    %c0_i32_1 = arith.constant 0 : i32
    return %c0_i32, %c0_i32_0 : i32, i32
  }
  func.func @transform_2(%arg0: i32) -> (i32, i32) {
    %c0_i32 = arith.constant 0 : i32
    %c0_i32_0 = arith.constant 0 : i32
    %c0_i32_1 = arith.constant 0 : i32
    return %c0_i32, %c0_i32_0 : i32, i32
  }
  func.func @transform_3(%arg0: i32) -> (i32, i32) {
    %c0_i32 = arith.constant 0 : i32
    %c0_i32_0 = arith.constant 0 : i32
    return %arg0, %c0_i32 : i32, i32
  }
}

</mosaic_0001>

<bundles_post_ra>
// kernel: deterministic_actor_critic_forward.1
= control target key start
LH: loop header
LB: loop body
LE: loop exit
PB: predicated region body
PF: predicated region fallthrough
CT: control target
= control target key end

     0   :  { %v163_v1 = vmov 0.0   ;;  %vm164_vm0 = vmmov 0   ;;  %s207_s0 = inlined_call_operand.vmem [shape: f32[8,32], index: 0, kind: input, shape index: {}]   ;;  %s208_s1 = inlined_call_operand.vmem [shape: f32[32,8], index: 1, kind: input, shape index: {}]   ;;  %s209_s2 = inlined_call_operand.vmem [shape: f32[1,8], index: 2, kind: input, shape index: {}]   ;;  %s210_s3 = inlined_call_operand.hbm [shape: f32[8,8], index: 3, kind: output, shape index: {}]  }
   0x1   :  { %v19_v0 = vld [vmem:[%s208_s1 + $0x18] sm:$0xff]  ;;  %125 = vmatprep.subr.mxu0 %v163_v1  ;;  %v18_v2 = vld [vmem:[%s208_s1 + $0x10] sm:$0xff]  ;;  %133 = vmatprep.mubr.msk.f32.mxu0 %vm164_vm0, %v163_v1 }
   0x2   :  { %126 = vmatpush3.msra.mxu0 %v19_v0 }
   0x3   :  { %8 = vsyncpa [#allocation3], 0  ;;  %127 = vmatprep.subr.mxu0 %v163_v1  ;;  %v17_v3 = vld [vmem:[%s208_s1 + $0x8] sm:$0xff]  ;;  %v16_v4 = vld [vmem:[%s208_s1] sm:$0xff]  ;;  %vm27_vm1 = vcmask 261120   ;;  %s165_s24 = smov [#allocation2]  }
   0x4   :  { %128 = vmatpush3.msra.mxu0 %v18_v2  ;;  %v15_v5 = vld [vmem:[%s207_s0] sm:$0xff]  ;;  %s110_s25 = sshll.u32 %s165_s24, 4  ;;  %vm102_vm2 = vcmask 64512   ;;  %s111_s25 = int_to_ptr.vmem [resolvable:$true] %s110_s25 }
   0x5   :  { %129 = vmatprep.subr.mxu0 %v163_v1  ;;  %v118_v6 = vld [vmem:[%s209_s2] ss:$0 sm:$0xff]  ;;  %s141_s1 = scalar_lea.vmem %s111_s25, 128  ;;  %p146_p1 = scmp.lt.s32.totalorder %s111_s25, %s111_s25 }
   0x6   :  { %130 = vmatpush3.msra.mxu0 %v17_v3  ;;  %p142_p0 = scmp.ne.s32.totalorder %s111_s25, %s141_s1  ;;  %p147_p2 = scmp.lt.s32.totalorder %s141_s1, %s141_s1 }
   0x7   :  { %131 = vmatprep.subr.mxu0 %v163_v1 }
   0x8   :  { %132 = vmatpush3.msra.mxu0 %v16_v4  ;;  %p148_p3 = por %p147_p2, %p146_p1 }
   0x9   :  { %134 = vmatmul.mubr.msk.f32.vlgmr.msra.gmra.mxu0 %vm27_vm1, %v15_v5 }
   0xa   :  { %p149_p4 = pnand %p148_p3, %p142_p0 }
  0xc9   :  { %v97_v7 = vpop.f32.mrf.mxu0 }
  0xca   :  { %v98_v8 = vadd.f32 %v118_v6, %v97_v7 }
  0xcb   :  { %v135_v9 = vpop.f32.mrf.mxu0 }
  0xcc   :  { %139 = vtanh.f32 %v98_v8 }
  0xd9   :  { %v140_v10 = vpop.eup %139 }
  0xda   :  { %103 = vst.msk [vmem:[#allocation2] sm:$0xff] %vm102_vm2, %v140_v10 }
  0xdb   :  { %152 = shalt.err (!%p149_p4)
}
  0xdc   :  { %113 = dma.vmem_to_hbm [thread:$0]  %s111_s25, 128, %s210_s3, [#allocation3]  }
  0xdd   :  { %161 = dma.done.wait [#allocation3], 128  }
  0xde   :  { %162 = vsyncadd [#allocation3], 4294967168 }
  0xdf   :  { %117 = vsyncpa [#allocation3], 1 }

</bundles_post_ra>
